<compile_context>
chip_gen: v7x
topology: tpu7x:2x2x1
jax: 0.10.0
libtpu: 0.0.40
codegen_flags: <defaults>
</compile_context>

<pallas_src>
import functools
import math

import numpy as np
import jax
import jax.numpy as jnp
from jax.experimental import pallas as pl
from jax.experimental.pallas import tpu as pltpu

NUM_LAYERS = 7


def _round_up(n, m):
    return ((n + m - 1) // m) * m


def _cdiv(a, b):
    return -(-a // b)


# -----------------------------------------------------------------------------
# Activations.
# -----------------------------------------------------------------------------
def _gelu_exact(x):
    # PyTorch nn.GELU() default (approximate='none'): 0.5*x*(1+erf(x/sqrt(2)))
    return 0.5 * x * (1.0 + jax.lax.erf(x * (1.0 / math.sqrt(2.0))))


def _gelu_tanh(x):
    # PyTorch GELU(approximate='tanh'); tanh lowers to the EUP (free bundle slot).
    c = math.sqrt(2.0 / math.pi)
    return 0.5 * x * (1.0 + jnp.tanh(c * (x + 0.044715 * x * x * x)))


# -----------------------------------------------------------------------------
# Hardware-generation heuristics (safe fallbacks).
# -----------------------------------------------------------------------------
def _device_kind():
    try:
        return jax.devices()[0].device_kind.lower()
    except Exception:
        return ""


def _pick_lanes():
    """Operand width: 256 on the 256x256 MXU generations (v6e/v7x), else 128."""
    kind = _device_kind()
    if ("v6" in kind) or ("v7" in kind) or ("tpu7" in kind) or ("7x" in kind):
        return 256
    return 128


def _pick_vmem_limit():
    kind = _device_kind()
    if ("v7" in kind) or ("tpu7" in kind) or ("7x" in kind):
        return 48 * 1024 * 1024       # v7x: 64 MiB physical, leave headroom
    if ("v2" in kind) or ("v3" in kind):
        return 12 * 1024 * 1024       # old gens: 16 MiB physical
    return 96 * 1024 * 1024           # v5e / v6e: 128 MiB physical


# -----------------------------------------------------------------------------
# Pallas kernel: 7-layer MLP on block-diagonally packed samples.
#   x:   (TB, L)    bf16   (pack_n samples per row, one per 32-lane group)
#   w:   (7, L, L)  bf16   (block-diagonal replicated weights; fc7 symmetrized)
#   b:   (7, 1, L)  f32    (biases replicated per group; latent folded into layer 0)
#   out: (TB, L)    f32
# -----------------------------------------------------------------------------
def stress_mlp_kernel(x_ref, w_ref, b_ref, out_ref, *, gelu_fn):
    f32 = jnp.float32
    h = x_ref[...]                                        # (TB, L) bf16
    for layer in range(NUM_LAYERS - 1):
        z = jnp.dot(h, w_ref[layer], preferred_element_type=f32) + b_ref[layer]
        h = gelu_fn(z).astype(jnp.bfloat16)               # f32 VPU/EUP, bf16 MXU operand
    out_ref[...] = (jnp.dot(h, w_ref[NUM_LAYERS - 1], preferred_element_type=f32)
                    + b_ref[NUM_LAYERS - 1])


def run_stress_mlp(x_packed, w_slab, b_slab, *, tb, use_exact_gelu=False):
    rows_pad, lanes = x_packed.shape
    assert w_slab.shape == (NUM_LAYERS, lanes, lanes)
    assert b_slab.shape == (NUM_LAYERS, 1, lanes)
    assert rows_pad % tb == 0 and tb % 16 == 0            # bf16 sublane tiling
    kernel = functools.partial(
        stress_mlp_kernel, gelu_fn=_gelu_exact if use_exact_gelu else _gelu_tanh)
    return pl.pallas_call(
        kernel,
        out_shape=jax.ShapeDtypeStruct((rows_pad, lanes), jnp.float32),
        grid_spec=pltpu.PrefetchScalarGridSpec(
            num_scalar_prefetch=0,
            grid=(rows_pad // tb,),
            in_specs=[
                pl.BlockSpec((tb, lanes), lambda i: (i, 0)),                    # activations
                pl.BlockSpec((NUM_LAYERS, lanes, lanes), lambda i: (0, 0, 0)),  # weights (resident)
                pl.BlockSpec((NUM_LAYERS, 1, lanes), lambda i: (0, 0, 0)),      # biases  (resident)
            ],
            out_specs=pl.BlockSpec((tb, lanes), lambda i: (i, 0)),
        ),
        compiler_params=pltpu.CompilerParams(
            dimension_semantics=("parallel",),            # megacore sharding on v7x
            vmem_limit_bytes=_pick_vmem_limit(),
        ),
    )(x_packed, w_slab, b_slab)


# -----------------------------------------------------------------------------
# Strain features: closed-form 3x3 math (no iterative SVD / LU det), plain JAX glue.
# TODO(synk): 3x3 feature extraction kept as XLA elementwise glue (trivially
# vectorized); only the MLP hot path runs in Pallas.
# -----------------------------------------------------------------------------
def _singular_values_3x3(FFt):
    """Singular values of F = sqrt(eigvals(F F^T)), descending (trig cubic formula)."""
    a00, a01, a02 = FFt[:, 0, 0], FFt[:, 0, 1], FFt[:, 0, 2]
    a11, a12, a22 = FFt[:, 1, 1], FFt[:, 1, 2], FFt[:, 2, 2]
    q = (a00 + a11 + a22) / 3.0
    p1 = a01 * a01 + a02 * a02 + a12 * a12
    p2 = (a00 - q) ** 2 + (a11 - q) ** 2 + (a22 - q) ** 2 + 2.0 * p1
    p = jnp.sqrt(jnp.maximum(p2 / 6.0, 1e-30))
    b00, b11, b22 = (a00 - q) / p, (a11 - q) / p, (a22 - q) / p
    b01, b02, b12 = a01 / p, a02 / p, a12 / p
    det_b = (b00 * (b11 * b22 - b12 * b12)
             - b01 * (b01 * b22 - b12 * b02)
             + b02 * (b01 * b12 - b11 * b02))
    r = jnp.clip(det_b / 2.0, -1.0, 1.0)
    phi = jnp.arccos(r) / 3.0
    e1 = q + 2.0 * p * jnp.cos(phi)
    e3 = q + 2.0 * p * jnp.cos(phi + 2.0 * jnp.pi / 3.0)
    e2 = 3.0 * q - e1 - e3
    near_scalar = p2 < 1e-20
    e1 = jnp.where(near_scalar, q, e1)
    e2 = jnp.where(near_scalar, q, e2)
    e3 = jnp.where(near_scalar, q, e3)
    eigs = jnp.stack([e1, e2, e3], axis=-1)
    return jnp.sqrt(jnp.maximum(eigs, 0.0))


def _det3(F):
    return (F[:, 0, 0] * (F[:, 1, 1] * F[:, 2, 2] - F[:, 1, 2] * F[:, 2, 1])
            - F[:, 0, 1] * (F[:, 1, 0] * F[:, 2, 2] - F[:, 1, 2] * F[:, 2, 0])
            + F[:, 0, 2] * (F[:, 1, 0] * F[:, 2, 1] - F[:, 1, 1] * F[:, 2, 0]))


def strain_features(F):
    """FFt_logJ_sigma_J_logJ1_J1_transform — elementwise closed-form."""
    B = F.shape[0]
    FFt = jnp.matmul(F, jnp.transpose(F, (0, 2, 1)))       # (B, 3, 3)
    J = jnp.maximum(_det3(F), 1e-6)
    J1 = jnp.maximum(F[:, 0, 0], 1e-6)
    sigma = _singular_values_3x3(FFt)                      # (B, 3) descending, like torch.svd
    return jnp.concatenate(
        [FFt.reshape(B, 9), jnp.log(J)[:, None], sigma, J[:, None],
         jnp.log(J1)[:, None], J1[:, None]], axis=-1)      # (B, 16)


# -----------------------------------------------------------------------------
# Parameter construction / packing.
# -----------------------------------------------------------------------------
def make_params(key, in_dim, hidden, embed_dim, num_traj):
    """Synthetic init mimicking nn.Linear default (uniform +-1/sqrt(fan_in))."""
    dims = [(in_dim, hidden)] + [(hidden, hidden)] * 5 + [(hidden, 9)]
    params = []
    keys = jax.random.split(key, 2 * len(dims) + 1)
    for i, (din, dout) in enumerate(dims):
        bound = 1.0 / math.sqrt(din)
        w = jax.random.uniform(keys[2 * i], (din, dout), jnp.float32, -bound, bound)
        b = jax.random.uniform(keys[2 * i + 1], (1, dout), jnp.float32, -bound, bound)
        params.append((w, b))
    traj_latent = jax.random.normal(keys[-1], (num_traj, embed_dim), jnp.float32)
    return params, traj_latent


def make_transpose_perm_matrix():
    # y = x @ P gives y[:, k] = x[:, t(k)] where t(k) = (k % 3) * 3 + k // 3
    P = np.zeros((9, 9), np.float32)
    for k in range(9):
        P[(k % 3) * 3 + (k // 3), k] = 1.0
    return P


def _pick_group(need, lanes):
    g = 8
    while g < need or (lanes % g) != 0:
        g *= 2
        if g > lanes:
            return lanes            # graceful degradation: no sample packing
    return g


def pack_params(params, latent_vec, *, lanes):
    """Fold latent into fc1 bias, fold symmetrization into fc7, then build
    block-diagonal (pack_n samples / row) weight & bias slabs."""
    P = make_transpose_perm_matrix()
    w1, b1 = np.asarray(params[0][0]), np.asarray(params[0][1]).reshape(-1)
    latent = np.asarray(latent_vec)
    embed_dim = latent.shape[0]
    din_eff = w1.shape[0] - embed_dim                      # strain(16) + C(9) = 25
    b1_f = b1 + latent @ w1[din_eff:, :]                   # latent is batch-constant
    w1_f = w1[:din_eff, :]

    w7, b7 = np.asarray(params[-1][0]), np.asarray(params[-1][1]).reshape(-1)
    w7_sym = 0.5 * (w7 + w7 @ P)                           # 0.5*(S + S^T) folded in
    b7_sym = 0.5 * (b7 + b7 @ P)

    layers = [(w1_f, b1_f)]
    layers += [(np.asarray(w), np.asarray(b).reshape(-1)) for (w, b) in params[1:-1]]
    layers += [(w7_sym, b7_sym)]
    assert len(layers) == NUM_LAYERS

    hidden = layers[1][0].shape[0]
    group = _pick_group(max(hidden, din_eff, 9), lanes)
    pack_n = lanes // group

    w_slab = np.zeros((NUM_LAYERS, lanes, lanes), np.float32)
    b_slab = np.zeros((NUM_LAYERS, 1, lanes), np.float32)
    for i, (w, b) in enumerate(layers):
        din, dout = w.shape
        assert din <= group and dout <= group
        for g in range(pack_n):                            # replicate on the diagonal
            w_slab[i, g * group:g * group + din, g * group:g * group + dout] = w
            b_slab[i, 0, g * group:g * group + dout] = b
    # bf16 MXU operands (f32 accumulation in-kernel); biases stay f32 for the VPU add.
    return (jnp.asarray(w_slab, jnp.bfloat16), jnp.asarray(b_slab, jnp.float32),
            din_eff, group, pack_n)


# -----------------------------------------------------------------------------
# Full forward pass.
# -----------------------------------------------------------------------------
def stress_nn_forward(F, C, w_slab, b_slab, *, din_eff, group, pack_n,
                      max_block=2048, use_exact_gelu=False):
    B = F.shape[0]
    lanes = group * pack_n
    strain = strain_features(F)                            # (B, 16)
    x = jnp.concatenate([strain, C.reshape(B, 9)], axis=-1).astype(jnp.float32)  # (B, 25)

    # Pack pack_n samples per lane row: features padded to `group` lanes per sample.
    rows = _cdiv(B, pack_n)
    Bp = rows * pack_n
    xg = jnp.pad(x, ((0, Bp - B), (0, group - din_eff)))   # (Bp, group)
    x_packed = xg.reshape(rows, lanes)                     # (rows, lanes)

    # Batch tile: as big as useful, multiple of 16 (bf16 sublanes), aim for >=4 grid
    # steps when the batch allows it (so v7x's two TensorCores both get work).
    tb = min(max_block, max(16, _round_up(_cdiv(rows, 4), 16)))
    rows_pad = _round_up(rows, tb)
    x_packed = jnp.pad(x_packed, ((0, rows_pad - rows), (0, 0))).astype(jnp.bfloat16)

    out = run_stress_mlp(x_packed, w_slab, b_slab, tb=tb,
                         use_exact_gelu=use_exact_gelu)    # (rows_pad, lanes) f32
    out9 = out[:rows].reshape(rows, pack_n, group)[:, :, :9].reshape(Bp, 9)[:B]
    return out9.reshape(B, 3, 3)


# Pure-JAX reference (exact-erf GELU, f32 weights) to validate packing / folding.
def reference_forward(F, C, params, latent_vec):
    B = F.shape[0]
    strain = strain_features(F)
    latent_b = jnp.broadcast_to(latent_vec[None, :], (B, latent_vec.shape[0]))
    h = jnp.concatenate([strain, C.reshape(B, 9), latent_b], axis=-1)
    for w, b in params[:-1]:
        h = _gelu_exact(h @ w + b)
    out = h @ params[-1][0] + params[-1][1]
    s = out.reshape(B, 3, 3)
    return 0.5 * (s + jnp.transpose(s, (0, 2, 1)))


if __name__ == "__main__":
    B = 8
    hidden_size = 32
    embed_dim = 8
    num_traj = 4
    in_dim = 16 + 9 + embed_dim

    key = jax.random.PRNGKey(0)
    kF, kC, kP = jax.random.split(key, 3)

    # F near identity so det > 0 and log(J) is well-behaved
    F = jnp.eye(3, dtype=jnp.float32)[None] + 0.1 * jax.random.normal(kF, (B, 3, 3), jnp.float32)
    C = 0.1 * jax.random.normal(kC, (B, 3, 3), jnp.float32)
    traj_id = 1

    params, traj_latent = make_params(kP, in_dim, hidden_size, embed_dim, num_traj)
    latent_vec = traj_latent[traj_id]

    lanes = _pick_lanes()                                   # 256 on v6e/v7x, 128 otherwise
    w_slab, b_slab, din_eff, group, pack_n = pack_params(params, latent_vec, lanes=lanes)

    fwd = jax.jit(functools.partial(stress_nn_forward, din_eff=din_eff,
                                    group=group, pack_n=pack_n))
    stress = jax.block_until_ready(fwd(F, C, w_slab, b_slab))

    assert stress.shape == (B, 3, 3)
    # Exact symmetry: symmetrization is baked into W7_sym's columns.
    assert bool(jnp.allclose(stress, jnp.transpose(stress, (0, 2, 1)), atol=1e-5))
    # Validate block-diag packing + latent fold against the pure-JAX reference
    # (kernel uses bf16 MXU operands and tanh GELU, hence the loose tolerance).
    ref = reference_forward(F, C, params, latent_vec)
    err = float(jnp.max(jnp.abs(stress - ref)))
    assert err < 5e-2, f"kernel vs reference mismatch: {err}"
    print("KERNEL_OK")
</pallas_src>

<mosaic_0001>
module attributes {stable_mosaic.version = 11 : i64} {
  func.func @stress_mlp_kernel(%arg0: i32, %arg1: memref<16x128xbf16, #tpu.memory_space<vmem>>, %arg2: memref<7x128x128xbf16, #tpu.memory_space<vmem>>, %arg3: memref<7x1x128xf32, #tpu.memory_space<vmem>>, %arg4: memref<16x128xf32, #tpu.memory_space<vmem>>) attributes {dimension_semantics = [#tpu.dimension_semantics<parallel>], iteration_bounds = array<i64: 1>, scalar_prefetch = 0 : i64, scratch_operands = 0 : i64, tpu.core_type = #tpu.core_type<tc>, window_params = [{transform_indices = @transform_0, window_bounds = array<i64: 16, 128>}, {pipeline_mode = #tpu.pipeline_mode<synchronous>, transform_indices = @transform_1, window_bounds = array<i64: 7, 128, 128>}, {pipeline_mode = #tpu.pipeline_mode<synchronous>, transform_indices = @transform_2, window_bounds = array<i64: 7, 1, 128>}, {transform_indices = @transform_3, window_bounds = array<i64: 16, 128>}]} {
    %c0 = arith.constant 0 : index
    %c0_0 = arith.constant 0 : index
    %0 = vector.load %arg1[%c0, %c0_0] : memref<16x128xbf16, #tpu.memory_space<vmem>>, vector<16x128xbf16>
    %c0_1 = arith.constant 0 : index
    %c0_2 = arith.constant 0 : index
    %c0_3 = arith.constant 0 : index
    %1 = vector.load %arg2[%c0_1, %c0_2, %c0_3] : memref<7x128x128xbf16, #tpu.memory_space<vmem>>, vector<1x128x128xbf16>
    %2 = vector.shape_cast %1 : vector<1x128x128xbf16> to vector<128x128xbf16>
    %cst = arith.constant dense<0.000000e+00> : vector<16x128xf32>
    %3 = tpu.matmul %0, %2, %cst {dimension_numbers = #tpu.dot_dimension_numbers<[1], [0], [0], [1], [0, 0, 1, 1], [], []>} : vector<16x128xbf16>, vector<128x128xbf16>, vector<16x128xf32> -> vector<16x128xf32>
    %c0_4 = arith.constant 0 : index
    %c0_5 = arith.constant 0 : index
    %c0_6 = arith.constant 0 : index
    %4 = vector.load %arg3[%c0_4, %c0_5, %c0_6] : memref<7x1x128xf32, #tpu.memory_space<vmem>>, vector<1x1x128xf32>
    %5 = vector.shape_cast %4 : vector<1x1x128xf32> to vector<1x128xf32>
    %6 = vector.broadcast %5 : vector<1x128xf32> to vector<16x128xf32>
    %7 = arith.addf %3, %6 : vector<16x128xf32>
    %cst_7 = arith.constant 5.000000e-01 : f32
    %8 = vector.broadcast %cst_7 : f32 to vector<16x128xf32>
    %9 = arith.mulf %8, %7 : vector<16x128xf32>
    %cst_8 = arith.constant 4.471500e-02 : f32
    %10 = vector.broadcast %cst_8 : f32 to vector<16x128xf32>
    %11 = arith.mulf %10, %7 : vector<16x128xf32>
    %12 = arith.mulf %11, %7 : vector<16x128xf32>
    %13 = arith.mulf %12, %7 : vector<16x128xf32>
    %14 = arith.addf %7, %13 : vector<16x128xf32>
    %cst_9 = arith.constant 0.797884583 : f32
    %15 = vector.broadcast %cst_9 : f32 to vector<16x128xf32>
    %16 = arith.mulf %15, %14 : vector<16x128xf32>
    %17 = math.tanh %16 : vector<16x128xf32>
    %cst_10 = arith.constant 1.000000e+00 : f32
    %18 = vector.broadcast %cst_10 : f32 to vector<16x128xf32>
    %19 = arith.addf %18, %17 : vector<16x128xf32>
    %20 = arith.mulf %9, %19 : vector<16x128xf32>
    %21 = arith.truncf %20 : vector<16x128xf32> to vector<16x128xbf16>
    %c1 = arith.constant 1 : index
    %c0_11 = arith.constant 0 : index
    %c0_12 = arith.constant 0 : index
    %22 = vector.load %arg2[%c1, %c0_11, %c0_12] : memref<7x128x128xbf16, #tpu.memory_space<vmem>>, vector<1x128x128xbf16>
    %23 = vector.shape_cast %22 : vector<1x128x128xbf16> to vector<128x128xbf16>
    %cst_13 = arith.constant dense<0.000000e+00> : vector<16x128xf32>
    %24 = tpu.matmul %21, %23, %cst_13 {dimension_numbers = #tpu.dot_dimension_numbers<[1], [0], [0], [1], [0, 0, 1, 1], [], []>} : vector<16x128xbf16>, vector<128x128xbf16>, vector<16x128xf32> -> vector<16x128xf32>
    %c1_14 = arith.constant 1 : index
    %c0_15 = arith.constant 0 : index
    %c0_16 = arith.constant 0 : index
    %25 = vector.load %arg3[%c1_14, %c0_15, %c0_16] : memref<7x1x128xf32, #tpu.memory_space<vmem>>, vector<1x1x128xf32>
    %26 = vector.shape_cast %25 : vector<1x1x128xf32> to vector<1x128xf32>
    %27 = vector.broadcast %26 : vector<1x128xf32> to vector<16x128xf32>
    %28 = arith.addf %24, %27 : vector<16x128xf32>
    %cst_17 = arith.constant 5.000000e-01 : f32
    %29 = vector.broadcast %cst_17 : f32 to vector<16x128xf32>
    %30 = arith.mulf %29, %28 : vector<16x128xf32>
    %cst_18 = arith.constant 4.471500e-02 : f32
    %31 = vector.broadcast %cst_18 : f32 to vector<16x128xf32>
    %32 = arith.mulf %31, %28 : vector<16x128xf32>
    %33 = arith.mulf %32, %28 : vector<16x128xf32>
    %34 = arith.mulf %33, %28 : vector<16x128xf32>
    %35 = arith.addf %28, %34 : vector<16x128xf32>
    %cst_19 = arith.constant 0.797884583 : f32
    %36 = vector.broadcast %cst_19 : f32 to vector<16x128xf32>
    %37 = arith.mulf %36, %35 : vector<16x128xf32>
    %38 = math.tanh %37 : vector<16x128xf32>
    %cst_20 = arith.constant 1.000000e+00 : f32
    %39 = vector.broadcast %cst_20 : f32 to vector<16x128xf32>
    %40 = arith.addf %39, %38 : vector<16x128xf32>
    %41 = arith.mulf %30, %40 : vector<16x128xf32>
    %42 = arith.truncf %41 : vector<16x128xf32> to vector<16x128xbf16>
    %c2 = arith.constant 2 : index
    %c0_21 = arith.constant 0 : index
    %c0_22 = arith.constant 0 : index
    %43 = vector.load %arg2[%c2, %c0_21, %c0_22] : memref<7x128x128xbf16, #tpu.memory_space<vmem>>, vector<1x128x128xbf16>
    %44 = vector.shape_cast %43 : vector<1x128x128xbf16> to vector<128x128xbf16>
    %cst_23 = arith.constant dense<0.000000e+00> : vector<16x128xf32>
    %45 = tpu.matmul %42, %44, %cst_23 {dimension_numbers = #tpu.dot_dimension_numbers<[1], [0], [0], [1], [0, 0, 1, 1], [], []>} : vector<16x128xbf16>, vector<128x128xbf16>, vector<16x128xf32> -> vector<16x128xf32>
    %c2_24 = arith.constant 2 : index
    %c0_25 = arith.constant 0 : index
    %c0_26 = arith.constant 0 : index
    %46 = vector.load %arg3[%c2_24, %c0_25, %c0_26] : memref<7x1x128xf32, #tpu.memory_space<vmem>>, vector<1x1x128xf32>
    %47 = vector.shape_cast %46 : vector<1x1x128xf32> to vector<1x128xf32>
    %48 = vector.broadcast %47 : vector<1x128xf32> to vector<16x128xf32>
    %49 = arith.addf %45, %48 : vector<16x128xf32>
    %cst_27 = arith.constant 5.000000e-01 : f32
    %50 = vector.broadcast %cst_27 : f32 to vector<16x128xf32>
    %51 = arith.mulf %50, %49 : vector<16x128xf32>
    %cst_28 = arith.constant 4.471500e-02 : f32
    %52 = vector.broadcast %cst_28 : f32 to vector<16x128xf32>
    %53 = arith.mulf %52, %49 : vector<16x128xf32>
    %54 = arith.mulf %53, %49 : vector<16x128xf32>
    %55 = arith.mulf %54, %49 : vector<16x128xf32>
    %56 = arith.addf %49, %55 : vector<16x128xf32>
    %cst_29 = arith.constant 0.797884583 : f32
    %57 = vector.broadcast %cst_29 : f32 to vector<16x128xf32>
    %58 = arith.mulf %57, %56 : vector<16x128xf32>
    %59 = math.tanh %58 : vector<16x128xf32>
    %cst_30 = arith.constant 1.000000e+00 : f32
    %60 = vector.broadcast %cst_30 : f32 to vector<16x128xf32>
    %61 = arith.addf %60, %59 : vector<16x128xf32>
    %62 = arith.mulf %51, %61 : vector<16x128xf32>
    %63 = arith.truncf %62 : vector<16x128xf32> to vector<16x128xbf16>
    %c3 = arith.constant 3 : index
    %c0_31 = arith.constant 0 : index
    %c0_32 = arith.constant 0 : index
    %64 = vector.load %arg2[%c3, %c0_31, %c0_32] : memref<7x128x128xbf16, #tpu.memory_space<vmem>>, vector<1x128x128xbf16>
    %65 = vector.shape_cast %64 : vector<1x128x128xbf16> to vector<128x128xbf16>
    %cst_33 = arith.constant dense<0.000000e+00> : vector<16x128xf32>
    %66 = tpu.matmul %63, %65, %cst_33 {dimension_numbers = #tpu.dot_dimension_numbers<[1], [0], [0], [1], [0, 0, 1, 1], [], []>} : vector<16x128xbf16>, vector<128x128xbf16>, vector<16x128xf32> -> vector<16x128xf32>
    %c3_34 = arith.constant 3 : index
    %c0_35 = arith.constant 0 : index
    %c0_36 = arith.constant 0 : index
    %67 = vector.load %arg3[%c3_34, %c0_35, %c0_36] : memref<7x1x128xf32, #tpu.memory_space<vmem>>, vector<1x1x128xf32>
    %68 = vector.shape_cast %67 : vector<1x1x128xf32> to vector<1x128xf32>
    %69 = vector.broadcast %68 : vector<1x128xf32> to vector<16x128xf32>
    %70 = arith.addf %66, %69 : vector<16x128xf32>
    %cst_37 = arith.constant 5.000000e-01 : f32
    %71 = vector.broadcast %cst_37 : f32 to vector<16x128xf32>
    %72 = arith.mulf %71, %70 : vector<16x128xf32>
    %cst_38 = arith.constant 4.471500e-02 : f32
    %73 = vector.broadcast %cst_38 : f32 to vector<16x128xf32>
    %74 = arith.mulf %73, %70 : vector<16x128xf32>
    %75 = arith.mulf %74, %70 : vector<16x128xf32>
    %76 = arith.mulf %75, %70 : vector<16x128xf32>
    %77 = arith.addf %70, %76 : vector<16x128xf32>
    %cst_39 = arith.constant 0.797884583 : f32
    %78 = vector.broadcast %cst_39 : f32 to vector<16x128xf32>
    %79 = arith.mulf %78, %77 : vector<16x128xf32>
    %80 = math.tanh %79 : vector<16x128xf32>
    %cst_40 = arith.constant 1.000000e+00 : f32
    %81 = vector.broadcast %cst_40 : f32 to vector<16x128xf32>
    %82 = arith.addf %81, %80 : vector<16x128xf32>
    %83 = arith.mulf %72, %82 : vector<16x128xf32>
    %84 = arith.truncf %83 : vector<16x128xf32> to vector<16x128xbf16>
    %c4 = arith.constant 4 : index
    %c0_41 = arith.constant 0 : index
    %c0_42 = arith.constant 0 : index
    %85 = vector.load %arg2[%c4, %c0_41, %c0_42] : memref<7x128x128xbf16, #tpu.memory_space<vmem>>, vector<1x128x128xbf16>
    %86 = vector.shape_cast %85 : vector<1x128x128xbf16> to vector<128x128xbf16>
    %cst_43 = arith.constant dense<0.000000e+00> : vector<16x128xf32>
    %87 = tpu.matmul %84, %86, %cst_43 {dimension_numbers = #tpu.dot_dimension_numbers<[1], [0], [0], [1], [0, 0, 1, 1], [], []>} : vector<16x128xbf16>, vector<128x128xbf16>, vector<16x128xf32> -> vector<16x128xf32>
    %c4_44 = arith.constant 4 : index
    %c0_45 = arith.constant 0 : index
    %c0_46 = arith.constant 0 : index
    %88 = vector.load %arg3[%c4_44, %c0_45, %c0_46] : memref<7x1x128xf32, #tpu.memory_space<vmem>>, vector<1x1x128xf32>
    %89 = vector.shape_cast %88 : vector<1x1x128xf32> to vector<1x128xf32>
    %90 = vector.broadcast %89 : vector<1x128xf32> to vector<16x128xf32>
    %91 = arith.addf %87, %90 : vector<16x128xf32>
    %cst_47 = arith.constant 5.000000e-01 : f32
    %92 = vector.broadcast %cst_47 : f32 to vector<16x128xf32>
    %93 = arith.mulf %92, %91 : vector<16x128xf32>
    %cst_48 = arith.constant 4.471500e-02 : f32
    %94 = vector.broadcast %cst_48 : f32 to vector<16x128xf32>
    %95 = arith.mulf %94, %91 : vector<16x128xf32>
    %96 = arith.mulf %95, %91 : vector<16x128xf32>
    %97 = arith.mulf %96, %91 : vector<16x128xf32>
    %98 = arith.addf %91, %97 : vector<16x128xf32>
    %cst_49 = arith.constant 0.797884583 : f32
    %99 = vector.broadcast %cst_49 : f32 to vector<16x128xf32>
    %100 = arith.mulf %99, %98 : vector<16x128xf32>
    %101 = math.tanh %100 : vector<16x128xf32>
    %cst_50 = arith.constant 1.000000e+00 : f32
    %102 = vector.broadcast %cst_50 : f32 to vector<16x128xf32>
    %103 = arith.addf %102, %101 : vector<16x128xf32>
    %104 = arith.mulf %93, %103 : vector<16x128xf32>
    %105 = arith.truncf %104 : vector<16x128xf32> to vector<16x128xbf16>
    %c5 = arith.constant 5 : index
    %c0_51 = arith.constant 0 : index
    %c0_52 = arith.constant 0 : index
    %106 = vector.load %arg2[%c5, %c0_51, %c0_52] : memref<7x128x128xbf16, #tpu.memory_space<vmem>>, vector<1x128x128xbf16>
    %107 = vector.shape_cast %106 : vector<1x128x128xbf16> to vector<128x128xbf16>
    %cst_53 = arith.constant dense<0.000000e+00> : vector<16x128xf32>
    %108 = tpu.matmul %105, %107, %cst_53 {dimension_numbers = #tpu.dot_dimension_numbers<[1], [0], [0], [1], [0, 0, 1, 1], [], []>} : vector<16x128xbf16>, vector<128x128xbf16>, vector<16x128xf32> -> vector<16x128xf32>
    %c5_54 = arith.constant 5 : index
    %c0_55 = arith.constant 0 : index
    %c0_56 = arith.constant 0 : index
    %109 = vector.load %arg3[%c5_54, %c0_55, %c0_56] : memref<7x1x128xf32, #tpu.memory_space<vmem>>, vector<1x1x128xf32>
    %110 = vector.shape_cast %109 : vector<1x1x128xf32> to vector<1x128xf32>
    %111 = vector.broadcast %110 : vector<1x128xf32> to vector<16x128xf32>
    %112 = arith.addf %108, %111 : vector<16x128xf32>
    %cst_57 = arith.constant 5.000000e-01 : f32
    %113 = vector.broadcast %cst_57 : f32 to vector<16x128xf32>
    %114 = arith.mulf %113, %112 : vector<16x128xf32>
    %cst_58 = arith.constant 4.471500e-02 : f32
    %115 = vector.broadcast %cst_58 : f32 to vector<16x128xf32>
    %116 = arith.mulf %115, %112 : vector<16x128xf32>
    %117 = arith.mulf %116, %112 : vector<16x128xf32>
    %118 = arith.mulf %117, %112 : vector<16x128xf32>
    %119 = arith.addf %112, %118 : vector<16x128xf32>
    %cst_59 = arith.constant 0.797884583 : f32
    %120 = vector.broadcast %cst_59 : f32 to vector<16x128xf32>
    %121 = arith.mulf %120, %119 : vector<16x128xf32>
    %122 = math.tanh %121 : vector<16x128xf32>
    %cst_60 = arith.constant 1.000000e+00 : f32
    %123 = vector.broadcast %cst_60 : f32 to vector<16x128xf32>
    %124 = arith.addf %123, %122 : vector<16x128xf32>
    %125 = arith.mulf %114, %124 : vector<16x128xf32>
    %126 = arith.truncf %125 : vector<16x128xf32> to vector<16x128xbf16>
    %c6 = arith.constant 6 : index
    %c0_61 = arith.constant 0 : index
    %c0_62 = arith.constant 0 : index
    %127 = vector.load %arg2[%c6, %c0_61, %c0_62] : memref<7x128x128xbf16, #tpu.memory_space<vmem>>, vector<1x128x128xbf16>
    %128 = vector.shape_cast %127 : vector<1x128x128xbf16> to vector<128x128xbf16>
    %cst_63 = arith.constant dense<0.000000e+00> : vector<16x128xf32>
    %129 = tpu.matmul %126, %128, %cst_63 {dimension_numbers = #tpu.dot_dimension_numbers<[1], [0], [0], [1], [0, 0, 1, 1], [], []>} : vector<16x128xbf16>, vector<128x128xbf16>, vector<16x128xf32> -> vector<16x128xf32>
    %c6_64 = arith.constant 6 : index
    %c0_65 = arith.constant 0 : index
    %c0_66 = arith.constant 0 : index
    %130 = vector.load %arg3[%c6_64, %c0_65, %c0_66] : memref<7x1x128xf32, #tpu.memory_space<vmem>>, vector<1x1x128xf32>
    %131 = vector.shape_cast %130 : vector<1x1x128xf32> to vector<1x128xf32>
    %132 = vector.broadcast %131 : vector<1x128xf32> to vector<16x128xf32>
    %133 = arith.addf %129, %132 : vector<16x128xf32>
    %c0_67 = arith.constant 0 : index
    %c0_68 = arith.constant 0 : index
    %134 = vector.load %arg4[%c0_67, %c0_68] : memref<16x128xf32, #tpu.memory_space<vmem>>, vector<16x128xf32>
    tpu.vector_store %arg4[%c0_67, %c0_68], %133 {strides = array<i32>} : memref<16x128xf32, #tpu.memory_space<vmem>>, vector<16x128xf32>,
    return
  }
  func.func @transform_0(%arg0: i32) -> (i32, i32) {
    %c0_i32 = arith.constant 0 : i32
    %c0_i32_0 = arith.constant 0 : i32
    return %arg0, %c0_i32 : i32, i32
  }
  func.func @transform_1(%arg0: i32) -> (i32, i32, i32) {
    %c0_i32 = arith.constant 0 : i32
    %c0_i32_0 = arith.constant 0 : i32
    %c0_i32_1 = arith.constant 0 : i32
    %c0_i32_2 = arith.constant 0 : i32
    return %c0_i32, %c0_i32_0, %c0_i32_1 : i32, i32, i32
  }
  func.func @transform_2(%arg0: i32) -> (i32, i32, i32) {
    %c0_i32 = arith.constant 0 : i32
    %c0_i32_0 = arith.constant 0 : i32
    %c0_i32_1 = arith.constant 0 : i32
    %c0_i32_2 = arith.constant 0 : i32
    return %c0_i32, %c0_i32_0, %c0_i32_1 : i32, i32, i32
  }
  func.func @transform_3(%arg0: i32) -> (i32, i32) {
    %c0_i32 = arith.constant 0 : i32
    %c0_i32_0 = arith.constant 0 : i32
    return %arg0, %c0_i32 : i32, i32
  }
}

</mosaic_0001>

<bundles_post_ra>
// kernel: stress_nn_forward.1
= control target key start
LH: loop header
LB: loop body
LE: loop exit
PB: predicated region body
PF: predicated region fallthrough
CT: control target
= control target key end

     0   :  { %8 = vsyncpa [#allocation3], 0  ;;  %s1606_s0 = inlined_call_operand.hbm [shape: bf16[16,128], index: 0, kind: input, shape index: {}]   ;;  %s1607_s1 = inlined_call_operand.hbm [shape: bf16[7,128,128], index: 1, kind: input, shape index: {}]   ;;  %s1608_s2 = inlined_call_operand.hbm [shape: f32[7,1,128], index: 2, kind: input, shape index: {}]   ;;  %s1609_s3 = inlined_call_operand.hbm [shape: f32[16,128], index: 3, kind: output, shape index: {}]  }
   0x1   :  { %9 = vsyncpa [#allocation6], 0 }
   0x2   :  { %10 = vsyncpa [#allocation4], 0  ;;  %s1449_s12 = smov [#allocation5]   ;;  %s1450_s14 = smov [#allocation2]  }
   0x3   :  { %s28_s13 = sshll.u32 %s1449_s12, 4  ;;  %s16_s15 = sshll.u32 %s1450_s14, 4  ;;  %s29_s13 = int_to_ptr.vmem [resolvable:$true] %s28_s13  ;;  %s1481_s15 = int_to_ptr.vmem [resolvable:$true] %s16_s15 }
   0x4   :  { %s1355_s18 = scalar_lea.hbm %s1607_s1, 7168 }
   0x5   :  { %p1356_p0 = scmp.ne.s32.totalorder %s1607_s1, %s1355_s18  ;;  %p1359_p1 = scmp.lt.u32.totalorder %s1355_s18, %s1607_s1 }
   0x7   :  { %p1361_p2 = pnand %p1359_p1, %p1356_p0 }
   0x9   :  { %1364 = shalt.err (!%p1361_p2)
}
   0xa   :  { %s1365_s23 = scalar_lea.vmem %s29_s13, 7168  ;;  %p1370_p4 = scmp.lt.s32.totalorder %s29_s13, %s29_s13 }
   0xb   :  { %p1366_p3 = scmp.ne.s32.totalorder %s29_s13, %s1365_s23  ;;  %p1371_p5 = scmp.lt.s32.totalorder %s1365_s23, %s1365_s23 }
   0xd   :  { %p1372_p6 = por %p1371_p5, %p1370_p4 }
   0xf   :  { %p1373_p7 = pnand %p1372_p6, %p1366_p3 }
  0x11   :  { %1376 = shalt.err (!%p1373_p7)
}
  0x12   :  { %s1451_s24 = smov 64   ;;  %s1452_s25 = smov 4  }
  0x13   :  { %34 = dma.hbm_to_vmem [thread:$0]  %s1607_s1, 7168, %s29_s13, [#allocation6], %s1451_s24, %s1451_s24, %s1452_s25  }
  0x14   :  { %s1377_s30 = scalar_lea.hbm %s1606_s0, 128 }
  0x15   :  { %p1378_p8 = scmp.ne.s32.totalorder %s1606_s0, %s1377_s30  ;;  %p1381_p9 = scmp.lt.u32.totalorder %s1377_s30, %s1606_s0 }
  0x17   :  { %p1383_p10 = pnand %p1381_p9, %p1378_p8 }
  0x19   :  { %1386 = shalt.err (!%p1383_p10)
}
  0x1a   :  { %s1387_s8 = scalar_lea.vmem %s1481_s15, 128  ;;  %p1392_p12 = scmp.lt.s32.totalorder %s1481_s15, %s1481_s15 }
  0x1b   :  { %p1388_p11 = scmp.ne.s32.totalorder %s1481_s15, %s1387_s8  ;;  %p1393_p13 = scmp.lt.s32.totalorder %s1387_s8, %s1387_s8 }
  0x1d   :  { %p1394_p0 = por %p1393_p13, %p1392_p12 }
  0x1f   :  { %p1395_p1 = pnand %p1394_p0, %p1388_p11 }
  0x21   :  { %1398 = shalt.err (!%p1395_p1)
}
  0x22   :  { %22 = dma.hbm_to_vmem [thread:$0]  %s1606_s0, 128, %s1481_s15, [#allocation3], %s1451_s24, %s1451_s24, %s1452_s25  }
  0x23   :  { %s1453_s10 = smov [#allocation7]   ;;  %s1399_s14 = scalar_lea.hbm %s1608_s2, 112 }
  0x24   :  { %s40_s11 = sshll.u32 %s1453_s10, 4  ;;  %p1400_p2 = scmp.ne.s32.totalorder %s1608_s2, %s1399_s14  ;;  %s41_s11 = int_to_ptr.vmem [resolvable:$true] %s40_s11 }
  0x25   :  { %p1403_p3 = scmp.lt.u32.totalorder %s1399_s14, %s1608_s2 }
  0x27   :  { %p1405_p4 = pnand %p1403_p3, %p1400_p2 }
  0x29   :  { %1408 = shalt.err (!%p1405_p4)
}
  0x2a   :  { %s1409_s20 = scalar_lea.vmem %s41_s11, 112  ;;  %s1413_s0 = scalar_lea.vmem %s41_s11, 128 }
  0x2b   :  { %p1410_p5 = scmp.ne.s32.totalorder %s41_s11, %s1409_s20  ;;  %p1414_p6 = scmp.lt.s32.totalorder %s41_s11, %s41_s11 }
  0x2c   :  { %p1415_p7 = scmp.lt.s32.totalorder %s1413_s0, %s1409_s20 }
  0x2e   :  { %p1416_p8 = por %p1415_p7, %p1414_p6 }
  0x30   :  { %p1417_p9 = pnand %p1416_p8, %p1410_p5 }
  0x32   :  { %1420 = shalt.err (!%p1417_p9)
}
  0x33   :  { %s1454_s15 = smov 16   ;;  %s1455_s21 = smov 1  }
  0x34   :  { %46 = dma.hbm_to_vmem [thread:$0]  %s1608_s2, 112, %s41_s11, [#allocation6], %s1454_s15, %s1454_s15, %s1455_s21  }
  0x35   :  { %1443 = dma.done.wait [#allocation3], 128  }
  0x36   :  { %1444 = vsyncadd [#allocation3], 4294967168 }
  0x37   :  { %1445 = dma.done.wait [#allocation6], 7280  }
  0x38   :  { %1446 = vsyncadd [#allocation6], 4294960016  ;;  %v1456_v0 = vmov 0.0   ;;  %vm1457_vm0 = vmmov 0   ;;  %v1274_v1 = vld [vmem:[#allocation5] sm:$0xff]   ;;  %v1275_v2 = vld [vmem:[#allocation5 + $0x8] sm:$0xff]  }
  0x39   :  { %1122 = vmatprep.subr.bf16.mxu0 %v1456_v0  ;;  %1138 = vmatprep.mubr.msk.bf16.mxu0 %vm1457_vm0, %v1456_v0  ;;  %v1276_v3 = vld [vmem:[#allocation5 + $0x10] sm:$0xff]   ;;  %v1277_v4 = vld [vmem:[#allocation5 + $0x18] sm:$0xff]   ;;  %v1278_v5 = vld [vmem:[#allocation5 + $0x20] sm:$0xff]   ;;  %s1458_s2 = smov [#allocation8]  }
  0x3a   :  { %1142 = vmatprep.subr.bf16.mxu1 %v1456_v0  ;;  %1158 = vmatprep.mubr.msk.bf16.mxu1 %vm1457_vm0, %v1456_v0  ;;  %v1279_v6 = vld [vmem:[#allocation5 + $0x28] sm:$0xff]   ;;  %v1280_v7 = vld [vmem:[#allocation5 + $0x30] sm:$0xff]   ;;  %v1281_v8 = vld [vmem:[#allocation5 + $0x38] sm:$0xff]   ;;  %s982_s24 = sshll.u32 %s1458_s2, 4  ;;  %s983_s24 = int_to_ptr.vmem [resolvable:$true] %s982_s24 }
  0x3b   :  { %1123 = vmatpush3.bf16.msra.mxu0 %v1274_v1  ;;  %v1282_v9 = vld [vmem:[#allocation2] sm:$0xff]   ;;  %v1283_v10 = vld [vmem:[#allocation5 + $0x40] sm:$0xff]   ;;  %v1284_v11 = vld [vmem:[#allocation5 + $0x48] sm:$0xff]   ;;  %s1421_s25 = scalar_lea.vmem %s983_s24, 256  ;;  %p1426_p11 = scmp.lt.s32.totalorder %s983_s24, %s983_s24 }
  0x3c   :  { %1124 = vmatprep.subr.bf16.mxu0 %v1456_v0  ;;  %1143 = vmatpush3.bf16.msra.mxu1 %v1283_v10  ;;  %v1285_v12 = vld [vmem:[#allocation5 + $0x50] sm:$0xff]   ;;  %v1286_v13 = vld [vmem:[#allocation5 + $0x58] sm:$0xff]   ;;  %v1287_v14 = vld [vmem:[#allocation5 + $0x60] sm:$0xff]   ;;  %p1422_p10 = scmp.ne.s32.totalorder %s983_s24, %s1421_s25  ;;  %p1427_p12 = scmp.lt.s32.totalorder %s1421_s25, %s1421_s25 }
  0x3d   :  { %1144 = vmatprep.subr.bf16.mxu1 %v1456_v0  ;;  %v1288_v15 = vld [vmem:[#allocation5 + $0x68] sm:$0xff]   ;;  %v1289_v16 = vld [vmem:[#allocation5 + $0x70] sm:$0xff]   ;;  %v1290_v17 = vld [vmem:[#allocation5 + $0x78] sm:$0xff]  }
  0x3e   :  { %v995_v18 = vld [vmem:[#allocation7] ss:$0 sm:$0xff]  ;;  %v1292_v45 = vld [vmem:[#allocation5 + $0x88] sm:$0xff]   ;;  %v1293_v46 = vld [vmem:[#allocation5 + $0x90] sm:$0xff]   ;;  %p1428_p13 = por %p1427_p12, %p1426_p11 }
  0x3f   :  { %1125 = vmatpush3.bf16.msra.mxu0 %v1275_v2  ;;  %v1291_v44 = vld [vmem:[#allocation5 + $0x80] sm:$0xff]   ;;  %v1294_v47 = vld [vmem:[#allocation5 + $0x98] sm:$0xff]   ;;  %v1296_v49 = vld [vmem:[#allocation5 + $0xa8] sm:$0xff]  }
  0x40   :  { %1126 = vmatprep.subr.bf16.mxu0 %v1456_v0  ;;  %1145 = vmatpush3.bf16.msra.mxu1 %v1284_v11  ;;  %v1295_v48 = vld [vmem:[#allocation5 + $0xa0] sm:$0xff]   ;;  %v1297_v50 = vld [vmem:[#allocation5 + $0xb0] sm:$0xff]   ;;  %v1298_v51 = vld [vmem:[#allocation5 + $0xb8] sm:$0xff]   ;;  %p1429_p0 = pnand %p1428_p13, %p1422_p10 }
  0x41   :  { %1146 = vmatprep.subr.bf16.mxu1 %v1456_v0  ;;  %v1005_v52 = vld [vmem:[#allocation7 + $0x1] ss:$0 sm:$0xff] }
  0x43   :  { %1127 = vmatpush3.bf16.msra.mxu0 %v1276_v3 }
  0x44   :  { %1128 = vmatprep.subr.bf16.mxu0 %v1456_v0  ;;  %1147 = vmatpush3.bf16.msra.mxu1 %v1285_v12 }
  0x45   :  { %1148 = vmatprep.subr.bf16.mxu1 %v1456_v0 }
  0x47   :  { %1129 = vmatpush3.bf16.msra.mxu0 %v1277_v4 }
  0x48   :  { %1130 = vmatprep.subr.bf16.mxu0 %v1456_v0  ;;  %1149 = vmatpush3.bf16.msra.mxu1 %v1286_v13 }
  0x49   :  { %1150 = vmatprep.subr.bf16.mxu1 %v1456_v0 }
  0x4b   :  { %1131 = vmatpush3.bf16.msra.mxu0 %v1278_v5 }
  0x4c   :  { %1132 = vmatprep.subr.bf16.mxu0 %v1456_v0  ;;  %1151 = vmatpush3.bf16.msra.mxu1 %v1287_v14 }
  0x4d   :  { %1152 = vmatprep.subr.bf16.mxu1 %v1456_v0 }
  0x4f   :  { %1133 = vmatpush3.bf16.msra.mxu0 %v1279_v6 }
  0x50   :  { %1134 = vmatprep.subr.bf16.mxu0 %v1456_v0  ;;  %1153 = vmatpush3.bf16.msra.mxu1 %v1288_v15  ;;  %v1299_v15 = vld [vmem:[#allocation5 + $0xc0] sm:$0xff]  }
  0x51   :  { %1154 = vmatprep.subr.bf16.mxu1 %v1456_v0 }
  0x53   :  { %1135 = vmatpush3.bf16.msra.mxu0 %v1280_v7 }
  0x54   :  { %1136 = vmatprep.subr.bf16.mxu0 %v1456_v0  ;;  %1155 = vmatpush3.bf16.msra.mxu1 %v1289_v16  ;;  %v1300_v16 = vld [vmem:[#allocation5 + $0xc8] sm:$0xff]  }
  0x55   :  { %1156 = vmatprep.subr.bf16.mxu1 %v1456_v0 }
  0x57   :  { %1137 = vmatpush3.bf16.msra.mxu0 %v1281_v8 }
  0x58   :  { %1162 = vmatprep.subr.bf16.mxu0 %v1456_v0  ;;  %1157 = vmatpush3.bf16.msra.mxu1 %v1290_v17  ;;  %v1301_v17 = vld [vmem:[#allocation5 + $0xd0] sm:$0xff]  }
  0x59   :  { %1182 = vmatprep.subr.bf16.mxu1 %v1456_v0 }
  0x5a   :  { %1139 = vmatmul.mubr.bf16.vlgmr.msra.gmra.mrb[0].mxu0 %v1282_v9 }
  0x5b   :  { %1178 = vmatprep.mubr.msk.bf16.mxu0 %vm1457_vm0, %v1456_v0  ;;  %1163 = vmatpush3.bf16.msra.mxu0 %v1291_v44 }
  0x5c   :  { %1164 = vmatprep.subr.bf16.mxu0 %v1456_v0 }
  0x5f   :  { %1165 = vmatpush3.bf16.msra.mxu0 %v1292_v45 }
  0x60   :  { %1166 = vmatprep.subr.bf16.mxu0 %v1456_v0 }
  0x63   :  { %1167 = vmatpush3.bf16.msra.mxu0 %v1293_v46 }
  0x64   :  { %1168 = vmatprep.subr.bf16.mxu0 %v1456_v0 }
  0x67   :  { %1169 = vmatpush3.bf16.msra.mxu0 %v1294_v47 }
  0x68   :  { %1170 = vmatprep.subr.bf16.mxu0 %v1456_v0 }
  0x6b   :  { %1171 = vmatpush3.bf16.msra.mxu0 %v1295_v48 }
  0x6c   :  { %1172 = vmatprep.subr.bf16.mxu0 %v1456_v0 }
  0x6f   :  { %1173 = vmatpush3.bf16.msra.mxu0 %v1296_v49  ;;  %v1307_v49 = vld [vmem:[#allocation5 + $0x100] sm:$0xff]  }
  0x70   :  { %1174 = vmatprep.subr.bf16.mxu0 %v1456_v0 }
  0x73   :  { %1175 = vmatpush3.bf16.msra.mxu0 %v1297_v50  ;;  %v1308_v50 = vld [vmem:[#allocation5 + $0x108] sm:$0xff]  }
  0x74   :  { %1176 = vmatprep.subr.bf16.mxu0 %v1456_v0 }
  0x77   :  { %1177 = vmatpush3.bf16.msra.mxu0 %v1298_v51  ;;  %v1309_v51 = vld [vmem:[#allocation5 + $0x110] sm:$0xff]  }
  0x78   :  { %1202 = vmatprep.subr.bf16.mxu0 %v1456_v0 }
 0x12d   :  { %v170_v19 = vpop.f32.mrb[0].mxu0 }
 0x12e   :  { %v171_v20 = vadd.f32 %v995_v18, %v170_v19  ;;  %v1140_v21 = vpop.f32.mrb[1].mxu0  ;;  %v1303_v19 = vld [vmem:[#allocation5 + $0xe0] sm:$0xff]  }
 0x12f   :  { %v173_v22 = vpop.f32.mrb[2].mxu0  ;;  %v1305_v21 = vld [vmem:[#allocation5 + $0xf0] sm:$0xff]  }
 0x130   :  { %v179_v23 = vmul.f32 0.044715, %v171_v20  ;;  %v174_v24 = vadd.f32 %v995_v18, %v173_v22  ;;  %v1141_v25 = vpop.f32.mrb[3].mxu0  ;;  %v177_v38 = vmul.f32 0.5, %v171_v20  ;;  %v1302_v18 = vld [vmem:[#allocation5 + $0xd8] sm:$0xff]  }
 0x131   :  { %v1306_v22 = vld [vmem:[#allocation5 + $0xf8] sm:$0xff]  }
 0x132   :  { %v181_v26 = vmul.f32 %v179_v23, %v171_v20  ;;  %v180_v27 = vmul.f32 0.044715, %v174_v24  ;;  %v178_v39 = vmul.f32 0.5, %v174_v24  ;;  %v1014_v23 = vld [vmem:[#allocation7 + $0x2] ss:$0 sm:$0xff] }
 0x134   :  { %v183_v28 = vmul.f32 %v181_v26, %v171_v20  ;;  %v182_v29 = vmul.f32 %v180_v27, %v174_v24 }
 0x136   :  { %v184_v30 = vmul.f32 %v182_v29, %v174_v24  ;;  %v185_v31 = vadd.f32 %v183_v28, %v171_v20  ;;  %v1304_v20 = vld [vmem:[#allocation5 + $0xe8] sm:$0xff]  }
 0x138   :  { %v186_v32 = vadd.f32 %v184_v30, %v174_v24  ;;  %v187_v33 = vmul.f32 0.7978846, %v185_v31 }
 0x13a   :  { %v188_v34 = vmul.f32 0.7978846, %v186_v32  ;;  %1331 = vtanh.f32 %v187_v33 }
 0x13c   :  { %1333 = vtanh.f32 %v188_v34 }
 0x144   :  { %v1332_v35 = vpop.eup %1331 }
 0x145   :  { %v191_v36 = vadd.f32 1.0, %v1332_v35 }
 0x146   :  { %v1334_v37 = vpop.eup %1333 }
 0x147   :  { %v192_v40 = vadd.f32 1.0, %v1334_v37  ;;  %v193_v41 = vmul.f32 %v191_v36, %v177_v38 }
 0x149   :  { %v194_v42 = vmul.f32 %v192_v40, %v178_v39 }
 0x14b   :  { %v195_v43 = vpack.c.bf16 %v194_v42, %v193_v41 }
 0x14d   :  { %1159 = vmatmul.mubr.bf16.vlgmr.msra.gmra.mrb[0].mxu1 %v195_v43 }
 0x14e   :  { %1198 = vmatprep.mubr.msk.bf16.mxu1 %vm1457_vm0, %v1456_v0  ;;  %1183 = vmatpush3.bf16.msra.mxu1 %v1299_v15 }
 0x14f   :  { %1184 = vmatprep.subr.bf16.mxu1 %v1456_v0 }
 0x152   :  { %1185 = vmatpush3.bf16.msra.mxu1 %v1300_v16 }
 0x153   :  { %1186 = vmatprep.subr.bf16.mxu1 %v1456_v0 }
 0x156   :  { %1187 = vmatpush3.bf16.msra.mxu1 %v1301_v17 }
 0x157   :  { %1188 = vmatprep.subr.bf16.mxu1 %v1456_v0 }
 0x15a   :  { %1189 = vmatpush3.bf16.msra.mxu1 %v1302_v18 }
 0x15b   :  { %1190 = vmatprep.subr.bf16.mxu1 %v1456_v0 }
 0x15e   :  { %1191 = vmatpush3.bf16.msra.mxu1 %v1303_v19 }
 0x15f   :  { %1192 = vmatprep.subr.bf16.mxu1 %v1456_v0 }
 0x162   :  { %1193 = vmatpush3.bf16.msra.mxu1 %v1304_v20  ;;  %v1315_v20 = vld [vmem:[#allocation5 + $0x140] sm:$0xff]  }
 0x163   :  { %1194 = vmatprep.subr.bf16.mxu1 %v1456_v0 }
 0x166   :  { %1195 = vmatpush3.bf16.msra.mxu1 %v1305_v21  ;;  %v1316_v21 = vld [vmem:[#allocation5 + $0x148] sm:$0xff]  }
 0x167   :  { %1196 = vmatprep.subr.bf16.mxu1 %v1456_v0 }
 0x16a   :  { %1197 = vmatpush3.bf16.msra.mxu1 %v1306_v22  ;;  %v1317_v22 = vld [vmem:[#allocation5 + $0x150] sm:$0xff]  }
 0x16b   :  { %1222 = vmatprep.subr.bf16.mxu1 %v1456_v0 }
 0x220   :  { %v303_v53 = vpop.f32.mrb[0].mxu1 }
 0x221   :  { %v304_v54 = vadd.f32 %v1005_v52, %v303_v53  ;;  %v1160_v55 = vpop.f32.mrb[1].mxu1  ;;  %v1311_v53 = vld [vmem:[#allocation5 + $0x120] sm:$0xff]  }
 0x222   :  { %v306_v56 = vpop.f32.mrb[2].mxu1  ;;  %v1313_v55 = vld [vmem:[#allocation5 + $0x130] sm:$0xff]  }
 0x223   :  { %v312_v57 = vmul.f32 0.044715, %v304_v54  ;;  %v307_v58 = vadd.f32 %v1005_v52, %v306_v56  ;;  %v1161_v59 = vpop.f32.mrb[3].mxu1  ;;  %v310_v9 = vmul.f32 0.5, %v304_v54  ;;  %v1310_v52 = vld [vmem:[#allocation5 + $0x118] sm:$0xff]  }
 0x224   :  { %v1314_v56 = vld [vmem:[#allocation5 + $0x138] sm:$0xff]  }
 0x225   :  { %v314_v60 = vmul.f32 %v312_v57, %v304_v54  ;;  %v313_v61 = vmul.f32 0.044715, %v307_v58  ;;  %v311_v10 = vmul.f32 0.5, %v307_v58  ;;  %v1023_v57 = vld [vmem:[#allocation7 + $0x3] ss:$0 sm:$0xff] }
 0x227   :  { %v316_v62 = vmul.f32 %v314_v60, %v304_v54  ;;  %v315_v63 = vmul.f32 %v313_v61, %v307_v58 }
 0x229   :  { %v318_v1 = vadd.f32 %v316_v62, %v304_v54  ;;  %v317_v2 = vmul.f32 %v315_v63, %v307_v58  ;;  %v1312_v54 = vld [vmem:[#allocation5 + $0x128] sm:$0xff]  }
 0x22b   :  { %v320_v3 = vmul.f32 0.7978846, %v318_v1  ;;  %v319_v4 = vadd.f32 %v317_v2, %v307_v58 }
 0x22d   :  { %1335 = vtanh.f32 %v320_v3  ;;  %v321_v5 = vmul.f32 0.7978846, %v319_v4 }
 0x22f   :  { %1337 = vtanh.f32 %v321_v5 }
 0x237   :  { %v1336_v6 = vpop.eup %1335 }
 0x238   :  { %v324_v7 = vadd.f32 1.0, %v1336_v6 }
 0x239   :  { %v1338_v8 = vpop.eup %1337 }
 0x23a   :  { %v325_v11 = vadd.f32 1.0, %v1338_v8  ;;  %v326_v12 = vmul.f32 %v324_v7, %v310_v9 }
 0x23c   :  { %v327_v13 = vmul.f32 %v325_v11, %v311_v10 }
 0x23e   :  { %v328_v14 = vpack.c.bf16 %v327_v13, %v326_v12 }
 0x240   :  { %1179 = vmatmul.mubr.bf16.vlgmr.msra.gmra.mrb[4].mxu0 %v328_v14 }
 0x241   :  { %1218 = vmatprep.mubr.msk.bf16.mxu0 %vm1457_vm0, %v1456_v0  ;;  %1203 = vmatpush3.bf16.msra.mxu0 %v1307_v49 }
 0x242   :  { %1204 = vmatprep.subr.bf16.mxu0 %v1456_v0 }
 0x245   :  { %1205 = vmatpush3.bf16.msra.mxu0 %v1308_v50 }
 0x246   :  { %1206 = vmatprep.subr.bf16.mxu0 %v1456_v0 }
 0x249   :  { %1207 = vmatpush3.bf16.msra.mxu0 %v1309_v51 }
 0x24a   :  { %1208 = vmatprep.subr.bf16.mxu0 %v1456_v0 }
 0x24d   :  { %1209 = vmatpush3.bf16.msra.mxu0 %v1310_v52 }
 0x24e   :  { %1210 = vmatprep.subr.bf16.mxu0 %v1456_v0 }
 0x251   :  { %1211 = vmatpush3.bf16.msra.mxu0 %v1311_v53 }
 0x252   :  { %1212 = vmatprep.subr.bf16.mxu0 %v1456_v0 }
 0x255   :  { %1213 = vmatpush3.bf16.msra.mxu0 %v1312_v54  ;;  %v1323_v54 = vld [vmem:[#allocation5 + $0x180] sm:$0xff]  }
 0x256   :  { %1214 = vmatprep.subr.bf16.mxu0 %v1456_v0 }
 0x259   :  { %1215 = vmatpush3.bf16.msra.mxu0 %v1313_v55  ;;  %v1324_v55 = vld [vmem:[#allocation5 + $0x188] sm:$0xff]  }
 0x25a   :  { %1216 = vmatprep.subr.bf16.mxu0 %v1456_v0 }
 0x25d   :  { %1217 = vmatpush3.bf16.msra.mxu0 %v1314_v56  ;;  %v1325_v56 = vld [vmem:[#allocation5 + $0x190] sm:$0xff]  }
 0x25e   :  { %1242 = vmatprep.subr.bf16.mxu0 %v1456_v0 }
 0x313   :  { %v436_v24 = vpop.f32.mrb[4].mxu0 }
 0x314   :  { %v437_v25 = vadd.f32 %v1014_v23, %v436_v24  ;;  %v1180_v26 = vpop.f32.mrb[5].mxu0  ;;  %v1319_v24 = vld [vmem:[#allocation5 + $0x160] sm:$0xff]  }
 0x315   :  { %v439_v27 = vpop.f32.mrb[6].mxu0  ;;  %v1321_v26 = vld [vmem:[#allocation5 + $0x170] sm:$0xff]  }
 0x316   :  { %v445_v28 = vmul.f32 0.044715, %v437_v25  ;;  %v440_v29 = vadd.f32 %v1014_v23, %v439_v27  ;;  %v1181_v30 = vpop.f32.mrb[7].mxu0  ;;  %v443_v43 = vmul.f32 0.5, %v437_v25  ;;  %v1318_v23 = vld [vmem:[#allocation5 + $0x158] sm:$0xff]  }
 0x317   :  { %v1322_v27 = vld [vmem:[#allocation5 + $0x178] sm:$0xff]  }
 0x318   :  { %v447_v31 = vmul.f32 %v445_v28, %v437_v25  ;;  %v446_v32 = vmul.f32 0.044715, %v440_v29  ;;  %v444_v44 = vmul.f32 0.5, %v440_v29  ;;  %v1032_v28 = vld [vmem:[#allocation7 + $0x4] ss:$0 sm:$0xff] }
 0x31a   :  { %v449_v33 = vmul.f32 %v447_v31, %v437_v25  ;;  %v448_v34 = vmul.f32 %v446_v32, %v440_v29 }
 0x31c   :  { %v451_v35 = vadd.f32 %v449_v33, %v437_v25  ;;  %v450_v36 = vmul.f32 %v448_v34, %v440_v29  ;;  %v1320_v25 = vld [vmem:[#allocation5 + $0x168] sm:$0xff]  }
 0x31e   :  { %v453_v37 = vmul.f32 0.7978846, %v451_v35  ;;  %v452_v38 = vadd.f32 %v450_v36, %v440_v29 }
 0x320   :  { %1339 = vtanh.f32 %v453_v37  ;;  %v454_v39 = vmul.f32 0.7978846, %v452_v38 }
 0x322   :  { %1341 = vtanh.f32 %v454_v39 }
 0x32a   :  { %v1340_v40 = vpop.eup %1339 }
 0x32b   :  { %v457_v41 = vadd.f32 1.0, %v1340_v40 }
 0x32c   :  { %v1342_v42 = vpop.eup %1341 }
 0x32d   :  { %v458_v45 = vadd.f32 1.0, %v1342_v42  ;;  %v459_v46 = vmul.f32 %v457_v41, %v443_v43 }
 0x32f   :  { %v460_v47 = vmul.f32 %v458_v45, %v444_v44 }
 0x331   :  { %v461_v48 = vpack.c.bf16 %v460_v47, %v459_v46 }
 0x333   :  { %1199 = vmatmul.mubr.bf16.vlgmr.msra.gmra.mrb[4].mxu1 %v461_v48 }
 0x334   :  { %1238 = vmatprep.mubr.msk.bf16.mxu1 %vm1457_vm0, %v1456_v0  ;;  %1223 = vmatpush3.bf16.msra.mxu1 %v1315_v20 }
 0x335   :  { %1224 = vmatprep.subr.bf16.mxu1 %v1456_v0 }
 0x338   :  { %1225 = vmatpush3.bf16.msra.mxu1 %v1316_v21 }
 0x339   :  { %1226 = vmatprep.subr.bf16.mxu1 %v1456_v0 }
 0x33c   :  { %1227 = vmatpush3.bf16.msra.mxu1 %v1317_v22 }
 0x33d   :  { %1228 = vmatprep.subr.bf16.mxu1 %v1456_v0 }
 0x340   :  { %1229 = vmatpush3.bf16.msra.mxu1 %v1318_v23 }
 0x341   :  { %1230 = vmatprep.subr.bf16.mxu1 %v1456_v0 }
 0x344   :  { %1231 = vmatpush3.bf16.msra.mxu1 %v1319_v24  ;;  %v1050_v24 = vld [vmem:[#allocation7 + $0x6] ss:$0 sm:$0xff] }
 0x345   :  { %1232 = vmatprep.subr.bf16.mxu1 %v1456_v0 }
 0x348   :  { %1233 = vmatpush3.bf16.msra.mxu1 %v1320_v25 }
 0x349   :  { %1234 = vmatprep.subr.bf16.mxu1 %v1456_v0 }
 0x34c   :  { %1235 = vmatpush3.bf16.msra.mxu1 %v1321_v26 }
 0x34d   :  { %1236 = vmatprep.subr.bf16.mxu1 %v1456_v0 }
 0x350   :  { %1237 = vmatpush3.bf16.msra.mxu1 %v1322_v27 }
 0x406   :  { %v569_v58 = vpop.f32.mrb[4].mxu1 }
 0x407   :  { %v570_v59 = vadd.f32 %v1023_v57, %v569_v58  ;;  %v1200_v60 = vpop.f32.mrb[5].mxu1  ;;  %v1327_v58 = vld [vmem:[#allocation5 + $0x1a0] sm:$0xff]  }
 0x408   :  { %v572_v61 = vpop.f32.mrb[6].mxu1  ;;  %v1329_v60 = vld [vmem:[#allocation5 + $0x1b0] sm:$0xff]  }
 0x409   :  { %v578_v62 = vmul.f32 0.044715, %v570_v59  ;;  %v573_v63 = vadd.f32 %v1023_v57, %v572_v61  ;;  %v1201_v1 = vpop.f32.mrb[7].mxu1  ;;  %v576_v14 = vmul.f32 0.5, %v570_v59  ;;  %v1326_v57 = vld [vmem:[#allocation5 + $0x198] sm:$0xff]  }
 0x40a   :  { %v1330_v61 = vld [vmem:[#allocation5 + $0x1b8] sm:$0xff]  }
 0x40b   :  { %v580_v2 = vmul.f32 %v578_v62, %v570_v59  ;;  %v579_v3 = vmul.f32 0.044715, %v573_v63  ;;  %v577_v15 = vmul.f32 0.5, %v573_v63  ;;  %v1041_v62 = vld [vmem:[#allocation7 + $0x5] ss:$0 sm:$0xff] }
 0x40d   :  { %v582_v4 = vmul.f32 %v580_v2, %v570_v59  ;;  %v581_v5 = vmul.f32 %v579_v3, %v573_v63 }
 0x40f   :  { %v584_v6 = vadd.f32 %v582_v4, %v570_v59  ;;  %v583_v7 = vmul.f32 %v581_v5, %v573_v63  ;;  %v1328_v59 = vld [vmem:[#allocation5 + $0x1a8] sm:$0xff]  }
 0x411   :  { %v586_v8 = vmul.f32 0.7978846, %v584_v6  ;;  %v585_v9 = vadd.f32 %v583_v7, %v573_v63 }
 0x413   :  { %1343 = vtanh.f32 %v586_v8  ;;  %v587_v10 = vmul.f32 0.7978846, %v585_v9 }
 0x415   :  { %1345 = vtanh.f32 %v587_v10 }
 0x41d   :  { %v1344_v11 = vpop.eup %1343 }
 0x41e   :  { %v590_v12 = vadd.f32 1.0, %v1344_v11 }
 0x41f   :  { %v1346_v13 = vpop.eup %1345 }
 0x420   :  { %v591_v16 = vadd.f32 1.0, %v1346_v13  ;;  %v592_v17 = vmul.f32 %v590_v12, %v576_v14 }
 0x422   :  { %v593_v18 = vmul.f32 %v591_v16, %v577_v15 }
 0x424   :  { %v594_v19 = vpack.c.bf16 %v593_v18, %v592_v17 }
 0x426   :  { %1219 = vmatmul.mubr.bf16.vlgmr.msra.gmra.mrb[8].mxu0 %v594_v19 }
 0x427   :  { %1258 = vmatprep.mubr.msk.bf16.mxu0 %vm1457_vm0, %v1456_v0  ;;  %1243 = vmatpush3.bf16.msra.mxu0 %v1323_v54 }
 0x428   :  { %1244 = vmatprep.subr.bf16.mxu0 %v1456_v0 }
 0x42b   :  { %1245 = vmatpush3.bf16.msra.mxu0 %v1324_v55 }
 0x42c   :  { %1246 = vmatprep.subr.bf16.mxu0 %v1456_v0 }
 0x42f   :  { %1247 = vmatpush3.bf16.msra.mxu0 %v1325_v56 }
 0x430   :  { %1248 = vmatprep.subr.bf16.mxu0 %v1456_v0 }
 0x433   :  { %1249 = vmatpush3.bf16.msra.mxu0 %v1326_v57 }
 0x434   :  { %1250 = vmatprep.subr.bf16.mxu0 %v1456_v0 }
 0x437   :  { %1251 = vmatpush3.bf16.msra.mxu0 %v1327_v58 }
 0x438   :  { %1252 = vmatprep.subr.bf16.mxu0 %v1456_v0 }
 0x43b   :  { %1253 = vmatpush3.bf16.msra.mxu0 %v1328_v59 }
 0x43c   :  { %1254 = vmatprep.subr.bf16.mxu0 %v1456_v0 }
 0x43f   :  { %1255 = vmatpush3.bf16.msra.mxu0 %v1329_v60 }
 0x440   :  { %1256 = vmatprep.subr.bf16.mxu0 %v1456_v0 }
 0x443   :  { %1257 = vmatpush3.bf16.msra.mxu0 %v1330_v61 }
 0x4f9   :  { %v702_v29 = vpop.f32.mrb[8].mxu0 }
 0x4fa   :  { %v703_v30 = vadd.f32 %v1032_v28, %v702_v29  ;;  %v1220_v31 = vpop.f32.mrb[9].mxu0 }
 0x4fb   :  { %v705_v32 = vpop.f32.mrb[10].mxu0 }
 0x4fc   :  { %v711_v33 = vmul.f32 0.044715, %v703_v30  ;;  %v706_v34 = vadd.f32 %v1032_v28, %v705_v32  ;;  %v1221_v35 = vpop.f32.mrb[11].mxu0  ;;  %v709_v48 = vmul.f32 0.5, %v703_v30 }
 0x4fe   :  { %v713_v36 = vmul.f32 %v711_v33, %v703_v30  ;;  %v712_v37 = vmul.f32 0.044715, %v706_v34  ;;  %v710_v49 = vmul.f32 0.5, %v706_v34 }
 0x500   :  { %v715_v38 = vmul.f32 %v713_v36, %v703_v30  ;;  %v714_v39 = vmul.f32 %v712_v37, %v706_v34 }
 0x502   :  { %v717_v40 = vadd.f32 %v715_v38, %v703_v30  ;;  %v716_v41 = vmul.f32 %v714_v39, %v706_v34 }
 0x504   :  { %v719_v42 = vmul.f32 0.7978846, %v717_v40  ;;  %v718_v43 = vadd.f32 %v716_v41, %v706_v34 }
 0x506   :  { %1347 = vtanh.f32 %v719_v42  ;;  %v720_v44 = vmul.f32 0.7978846, %v718_v43 }
 0x508   :  { %1349 = vtanh.f32 %v720_v44 }
 0x510   :  { %v1348_v45 = vpop.eup %1347 }
 0x511   :  { %v723_v46 = vadd.f32 1.0, %v1348_v45 }
 0x512   :  { %v1350_v47 = vpop.eup %1349 }
 0x513   :  { %v724_v50 = vadd.f32 1.0, %v1350_v47  ;;  %v725_v51 = vmul.f32 %v723_v46, %v709_v48 }
 0x515   :  { %v726_v52 = vmul.f32 %v724_v50, %v710_v49 }
 0x517   :  { %v727_v53 = vpack.c.bf16 %v726_v52, %v725_v51 }
 0x519   :  { %1239 = vmatmul.mubr.bf16.vlgmr.msra.gmra.mrb[8].mxu1 %v727_v53 }
 0x5ec   :  { %v835_v63 = vpop.f32.mrb[8].mxu1 }
 0x5ed   :  { %v836_v1 = vadd.f32 %v1041_v62, %v835_v63  ;;  %v1240_v2 = vpop.f32.mrb[9].mxu1 }
 0x5ee   :  { %v838_v3 = vpop.f32.mrb[10].mxu1 }
 0x5ef   :  { %v844_v4 = vmul.f32 0.044715, %v836_v1  ;;  %v839_v5 = vadd.f32 %v1041_v62, %v838_v3  ;;  %v1241_v6 = vpop.f32.mrb[11].mxu1  ;;  %v842_v18 = vmul.f32 0.5, %v836_v1 }
 0x5f1   :  { %v846_v7 = vmul.f32 %v844_v4, %v836_v1  ;;  %v845_v8 = vmul.f32 0.044715, %v839_v5  ;;  %v843_v19 = vmul.f32 0.5, %v839_v5 }
 0x5f3   :  { %v848_v9 = vmul.f32 %v846_v7, %v836_v1  ;;  %v847_v10 = vmul.f32 %v845_v8, %v839_v5 }
 0x5f5   :  { %v850_v11 = vadd.f32 %v848_v9, %v836_v1  ;;  %v849_v12 = vmul.f32 %v847_v10, %v839_v5 }
 0x5f7   :  { %v852_v13 = vmul.f32 0.7978846, %v850_v11  ;;  %v851_v14 = vadd.f32 %v849_v12, %v839_v5 }
 0x5f9   :  { %1351 = vtanh.f32 %v852_v13  ;;  %v853_v15 = vmul.f32 0.7978846, %v851_v14 }
 0x5fb   :  { %1353 = vtanh.f32 %v853_v15 }
 0x603   :  { %v1352_v0 = vpop.eup %1351 }
 0x604   :  { %v856_v16 = vadd.f32 1.0, %v1352_v0 }
 0x605   :  { %v1354_v17 = vpop.eup %1353 }
 0x606   :  { %v857_v20 = vadd.f32 1.0, %v1354_v17  ;;  %v858_v21 = vmul.f32 %v856_v16, %v842_v18 }
 0x608   :  { %v859_v22 = vmul.f32 %v857_v20, %v843_v19 }
 0x60a   :  { %v860_v23 = vpack.c.bf16 %v859_v22, %v858_v21 }
 0x60c   :  { %1259 = vmatmul.mubr.bf16.vlgmr.msra.gmra.mrb[12].mxu0 %v860_v23 }
 0x6df   :  { %v968_v25 = vpop.f32.mrb[12].mxu0 }
 0x6e0   :  { %v969_v26 = vadd.f32 %v1050_v24, %v968_v25  ;;  %v1260_v27 = vpop.f32.mrb[13].mxu0 }
 0x6e1   :  { %v971_v28 = vpop.f32.mrb[14].mxu0 }
 0x6e2   :  { %975 = vst [vmem:[#allocation8] sm:$0xff] %v969_v26  ;;  %v972_v29 = vadd.f32 %v1050_v24, %v971_v28  ;;  %v1261_v30 = vpop.f32.mrb[15].mxu0 }
 0x6e4   :  { %976 = vst [vmem:[#allocation8 + $0x8] sm:$0xff] %v972_v29 }
 0x6e5   :  { %1432 = shalt.err (!%p1429_p0)
}
 0x6e6   :  { %s1433_s28 = scalar_lea.hbm %s1609_s3, 256 }
 0x6e7   :  { %p1434_p1 = scmp.ne.s32.totalorder %s1609_s3, %s1433_s28  ;;  %p1437_p2 = scmp.lt.u32.totalorder %s1433_s28, %s1609_s3 }
 0x6e9   :  { %p1439_p3 = pnand %p1437_p2, %p1434_p1 }
 0x6eb   :  { %1442 = shalt.err (!%p1439_p3)
}
 0x6ec   :  { %s1459_s6 = smov 128   ;;  %s1460_s7 = smov 8  }
 0x6ed   :  { %988 = dma.vmem_to_hbm [thread:$0]  %s983_s24, 256, %s1609_s3, [#allocation4], %s1459_s6, %s1459_s6, %s1460_s7  }
 0x6ee   :  { %1447 = dma.done.wait [#allocation4], 256  }
 0x6ef   :  { %1448 = vsyncadd [#allocation4], 4294967040 }
 0x6f0   :  { %992 = vsyncpa [#allocation3], 1 }
 0x6f1   :  { %993 = vsyncpa [#allocation6], 1 }
 0x6f2   :  { %994 = vsyncpa [#allocation4], 1 }

</bundles_post_ra>
